<compile_context>
chip_gen: v5e
topology: v5e:2x2
jax: 0.10.0
libtpu: 0.0.40
codegen_flags: <defaults>
</compile_context>

<pallas_src>
import functools

import jax
import jax.numpy as jnp
from jax.experimental import pallas as pl
from jax.experimental.pallas import tpu as pltpu


def _round_up(x, m):
    return ((x + m - 1) // m) * m


def _inner_recurrent_kernel(x_ref, w_ref, b_ref, o_ref, *,
                            n, tn, blocks_per_core, first_masked_block,
                            need_mask, compute_dtype):
    # x_ref: (tn, in_f)   w_ref: (in_f, out_p)   b_ref: (1, out_p)
    # o_ref: (1, out_p)   -- resident output block, accumulated in place.
    c = pl.program_id(0)              # TensorCore split ("parallel")
    i = pl.program_id(1)              # batch-block reduction ("arbitrary")
    blk = c * blocks_per_core + i     # global batch-block index (unclamped)

    @pl.when(i == 0)
    def _():
        o_ref[...] = jnp.zeros_like(o_ref)

    lhs = x_ref[...]
    rhs = w_ref[...]
    if compute_dtype != jnp.float32:
        lhs = lhs.astype(compute_dtype)
        rhs = rhs.astype(compute_dtype)
    h = jnp.dot(lhs, rhs, preferred_element_type=jnp.float32)
    h = h + b_ref[...]                    # bias inside the nonlinearity
    y = jnp.maximum(h, 0.01 * h)          # LeakyReLU(0.01)

    if need_mask:
        # Fast path: fully-valid blocks, no per-row mask work.
        @pl.when(blk < first_masked_block)
        def _():
            o_ref[...] += jnp.sum(y, axis=0, keepdims=True)

        # Slow path: blocks containing padded / out-of-bounds rows (the last
        # partial block and any overflow slot on the last core).  OOB rows
        # hold undefined data, so they MUST be selected to 0 before the sum.
        @pl.when(blk >= first_masked_block)
        def _():
            row = blk * tn + jax.lax.broadcasted_iota(jnp.int32, (tn, 1), 0)
            o_ref[...] += jnp.sum(jnp.where(row < n, y, 0.0), axis=0,
                                  keepdims=True)
    else:
        o_ref[...] += jnp.sum(y, axis=0, keepdims=True)


def prepare_params(w, b):
    """Lane-pad W/b once (hoisted out of the per-call path)."""
    in_f, out_f = w.shape
    out_p = _round_up(max(out_f, 128), 128)
    w_p = jnp.zeros((in_f, out_p), jnp.float32).at[:, :out_f].set(
        w.astype(jnp.float32))
    b_p = jnp.zeros((1, out_p), jnp.float32).at[0, :out_f].set(
        b.astype(jnp.float32))
    return w_p, b_p, out_f


def inner_recurrent_net_padded(x, w_p, b_p, out_f, *, tn=8192, cores=None,
                               compute_dtype=jnp.float32):
    """x: (N, in_f) f32, w_p: (in_f, out_p), b_p: (1, out_p) -> (out_f,) f32."""
    n, in_f = x.shape
    out_p = w_p.shape[1]

    # Batch tile: multiple of 8 sublanes, capped by N.  VMEM footprint per
    # buffer is tn*128*4 bytes due to lane padding; tn=8192 -> 4 MiB.
    tn = _round_up(min(tn, max(n, 8)), 8)
    n_blocks = pl.cdiv(n, tn)

    # Leading "parallel" axis: split batch blocks across TensorCores (v7x).
    if cores is None:
        cores = 2 if n_blocks >= 2 else 1
    cores = max(1, min(cores, n_blocks))
    bpc = pl.cdiv(n_blocks, cores)            # blocks per core

    first_masked_block = n // tn              # blocks >= this hold padded rows
    need_mask = (cores * bpc * tn) != n       # any padded rows / overflow slot

    kernel = functools.partial(
        _inner_recurrent_kernel, n=n, tn=tn, blocks_per_core=bpc,
        first_masked_block=first_masked_block, need_mask=need_mask,
        compute_dtype=compute_dtype)

    out = pl.pallas_call(
        kernel,
        out_shape=jax.ShapeDtypeStruct((cores, 1, out_p), jnp.float32),
        grid_spec=pltpu.PrefetchScalarGridSpec(
            num_scalar_prefetch=0,
            grid=(cores, bpc),
            in_specs=[
                # x tiles; clamp the block index so the (possible) overflow
                # slot on the last core re-reads a valid block -- its
                # contribution is zeroed by the row mask in the kernel.
                pl.BlockSpec(
                    (tn, in_f),
                    lambda c, i: (jnp.minimum(c * bpc + i, n_blocks - 1), 0)),
                pl.BlockSpec((in_f, out_p), lambda c, i: (0, 0)),   # W resident
                pl.BlockSpec((1, out_p), lambda c, i: (0, 0)),      # b resident
            ],
            # Per-core output row; leading dim squeezed so the kernel sees a
            # lane-dense (1, out_p) block resident across the reduction axis.
            out_specs=pl.BlockSpec((None, 1, out_p), lambda c, i: (c, 0, 0)),
        ),
        compiler_params=pltpu.CompilerParams(
            dimension_semantics=("parallel", "arbitrary")),
    )(x, w_p, b_p)
    # Sum the per-core partial rows and strip the lane padding.
    return jnp.sum(out, axis=(0, 1))[:out_f]


def inner_recurrent_net(x, w, b, *, tn=8192, cores=None,
                        compute_dtype=jnp.float32):
    """Convenience wrapper: pads W/b then calls the kernel."""
    w_p, b_p, out_f = prepare_params(w, b)
    return inner_recurrent_net_padded(x, w_p, b_p, out_f, tn=tn, cores=cores,
                                      compute_dtype=compute_dtype)


def reference(x, w, b):
    h = x @ w + b
    y = jnp.where(h >= 0.0, h, 0.01 * h)
    return jnp.sum(y, axis=0)


if __name__ == "__main__":
    input_size = 23
    output_size = 20

    key = jax.random.PRNGKey(0)
    kx1, kx2, kx3, kw, kb = jax.random.split(key, 5)

    # Deterministic init mimicking nn.Linear's uniform(-1/sqrt(in), 1/sqrt(in)).
    bound = 1.0 / (input_size ** 0.5)
    w = jax.random.uniform(kw, (input_size, output_size), jnp.float32,
                           -bound, bound)
    b = jax.random.uniform(kb, (output_size,), jnp.float32, -bound, bound)

    # W/b padding hoisted: done once, reused across calls (feedback #8).
    w_p, b_p, out_f = prepare_params(w, b)

    # Case 1: small batch -> single block, single core, no masking.
    x1 = jax.random.normal(kx1, (8, input_size), jnp.float32)
    out1 = jax.block_until_ready(
        inner_recurrent_net_padded(x1, w_p, b_p, out_f))
    ref1 = reference(x1, w, b)
    assert out1.shape == (output_size,)
    assert jnp.allclose(out1, ref1, atol=1e-3, rtol=1e-4), (out1, ref1)

    # Case 2: non-multiple batch + small tile -> 2-core split, partial block
    # mask and the clamped overflow slot are all exercised.
    x2 = jax.random.normal(kx2, (300, input_size), jnp.float32)
    out2 = jax.block_until_ready(
        inner_recurrent_net_padded(x2, w_p, b_p, out_f, tn=128))
    ref2 = reference(x2, w, b)
    assert out2.shape == (output_size,)
    assert jnp.allclose(out2, ref2, atol=1e-3, rtol=1e-4), (out2, ref2)

    # Case 3: even multi-block split (no masking path), convenience wrapper.
    x3 = jax.random.normal(kx3, (2048, input_size), jnp.float32)
    out3 = jax.block_until_ready(inner_recurrent_net(x3, w, b, tn=512))
    ref3 = reference(x3, w, b)
    assert out3.shape == (output_size,)
    assert jnp.allclose(out3, ref3, atol=1e-3, rtol=1e-4), (out3, ref3)

    print("KERNEL_OK")
</pallas_src>

<mosaic_0001>
module attributes {stable_mosaic.version = 11 : i64} {
  func.func @_inner_recurrent_kernel(%arg0: i32, %arg1: i32, %arg2: memref<8x23xf32, #tpu.memory_space<vmem>>, %arg3: memref<23x128xf32, #tpu.memory_space<vmem>>, %arg4: memref<1x128xf32, #tpu.memory_space<vmem>>, %arg5: memref<1x1x128xf32, #tpu.memory_space<vmem>>) attributes {dimension_semantics = [#tpu.dimension_semantics<parallel>, #tpu.dimension_semantics<arbitrary>], iteration_bounds = array<i64: 1, 1>, scalar_prefetch = 0 : i64, scratch_operands = 0 : i64, tpu.core_type = #tpu.core_type<tc>, window_params = [{transform_indices = @transform_0, window_bounds = array<i64: 8, 23>}, {pipeline_mode = #tpu.pipeline_mode<synchronous>, transform_indices = @transform_1, window_bounds = array<i64: 23, 128>}, {pipeline_mode = #tpu.pipeline_mode<synchronous>, transform_indices = @transform_2, window_bounds = array<i64: 1, 128>}, {transform_indices = @transform_3, window_bounds = array<i64: 1, 1, 128>}]} {
    %c0_i32 = arith.constant 0 : i32
    %0 = arith.cmpi eq, %arg1, %c0_i32 : i32
    %1 = arith.extui %0 : i1 to i32
    %c0_i32_0 = arith.constant 0 : i32
    %2 = arith.cmpi ne, %1, %c0_i32_0 : i32
    scf.if %2 {
      %cst_14 = arith.constant 0.000000e+00 : f32
      %20 = vector.broadcast %cst_14 : f32 to vector<1x128xf32>
      %c0_15 = arith.constant 0 : index
      %c0_16 = arith.constant 0 : index
      %c0_17 = arith.constant 0 : index
      %21 = vector.load %arg5[%c0_15, %c0_16, %c0_17] : memref<1x1x128xf32, #tpu.memory_space<vmem>>, vector<1x1x128xf32>
      %22 = vector.shape_cast %21 : vector<1x1x128xf32> to vector<1x128xf32>
      %23 = vector.shape_cast %20 : vector<1x128xf32> to vector<1x1x128xf32>
      tpu.vector_store %arg5[%c0_15, %c0_16, %c0_17], %23 {strides = array<i32>} : memref<1x1x128xf32, #tpu.memory_space<vmem>>, vector<1x1x128xf32>,
    } else {
    }
    %c0 = arith.constant 0 : index
    %c0_1 = arith.constant 0 : index
    %3 = vector.load %arg2[%c0, %c0_1] : memref<8x23xf32, #tpu.memory_space<vmem>>, vector<8x23xf32>
    %c0_2 = arith.constant 0 : index
    %c0_3 = arith.constant 0 : index
    %4 = vector.load %arg3[%c0_2, %c0_3] : memref<23x128xf32, #tpu.memory_space<vmem>>, vector<23x128xf32>
    %cst = arith.constant dense<0.000000e+00> : vector<8x128xf32>
    %5 = tpu.matmul %3, %4, %cst {dimension_numbers = #tpu.dot_dimension_numbers<[1], [0], [0], [1], [0, 0, 1, 1], [], []>} : vector<8x23xf32>, vector<23x128xf32>, vector<8x128xf32> -> vector<8x128xf32>
    %c0_4 = arith.constant 0 : index
    %c0_5 = arith.constant 0 : index
    %6 = vector.load %arg4[%c0_4, %c0_5] : memref<1x128xf32, #tpu.memory_space<vmem>>, vector<1x128xf32>
    %7 = vector.broadcast %6 : vector<1x128xf32> to vector<8x128xf32>
    %8 = arith.addf %5, %7 : vector<8x128xf32>
    %cst_6 = arith.constant 0.00999999977 : f32
    %9 = vector.broadcast %cst_6 : f32 to vector<8x128xf32>
    %10 = arith.mulf %9, %8 : vector<8x128xf32>
    %11 = arith.maximumf %8, %10 : vector<8x128xf32>
    %c0_7 = arith.constant 0 : index
    %c0_8 = arith.constant 0 : index
    %c0_9 = arith.constant 0 : index
    %12 = vector.load %arg5[%c0_7, %c0_8, %c0_9] : memref<1x1x128xf32, #tpu.memory_space<vmem>>, vector<1x1x128xf32>
    %13 = vector.shape_cast %12 : vector<1x1x128xf32> to vector<1x128xf32>
    %cst_10 = arith.constant dense<0.000000e+00> : vector<128xf32>
    %14 = vector.multi_reduction <add>, %11, %cst_10 [0] : vector<8x128xf32> to vector<128xf32>
    %15 = vector.shape_cast %14 : vector<128xf32> to vector<1x128xf32>
    %16 = arith.addf %13, %15 : vector<1x128xf32>
    %c0_11 = arith.constant 0 : index
    %c0_12 = arith.constant 0 : index
    %c0_13 = arith.constant 0 : index
    %17 = vector.load %arg5[%c0_11, %c0_12, %c0_13] : memref<1x1x128xf32, #tpu.memory_space<vmem>>, vector<1x1x128xf32>
    %18 = vector.shape_cast %17 : vector<1x1x128xf32> to vector<1x128xf32>
    %19 = vector.shape_cast %16 : vector<1x128xf32> to vector<1x1x128xf32>
    tpu.vector_store %arg5[%c0_11, %c0_12, %c0_13], %19 {strides = array<i32>} : memref<1x1x128xf32, #tpu.memory_space<vmem>>, vector<1x1x128xf32>,
    return
  }
  func.func @transform_0(%arg0: i32, %arg1: i32) -> (i32, i32) {
    %c1_i32 = arith.constant 1 : i32
    %0 = arith.muli %arg0, %c1_i32 : i32
    %1 = arith.addi %0, %arg1 : i32
    %c0_i32 = arith.constant 0 : i32
    %2 = arith.minsi %1, %c0_i32 : i32
    %c0_i32_0 = arith.constant 0 : i32
    %c0_i32_1 = arith.constant 0 : i32
    return %2, %c0_i32_0 : i32, i32
  }
  func.func @transform_1(%arg0: i32, %arg1: i32) -> (i32, i32) {
    %c0_i32 = arith.constant 0 : i32
    %c0_i32_0 = arith.constant 0 : i32
    %c0_i32_1 = arith.constant 0 : i32
    return %c0_i32, %c0_i32_0 : i32, i32
  }
  func.func @transform_2(%arg0: i32, %arg1: i32) -> (i32, i32) {
    %c0_i32 = arith.constant 0 : i32
    %c0_i32_0 = arith.constant 0 : i32
    %c0_i32_1 = arith.constant 0 : i32
    return %c0_i32, %c0_i32_0 : i32, i32
  }
  func.func @transform_3(%arg0: i32, %arg1: i32) -> (i32, i32, i32) {
    %c0_i32 = arith.constant 0 : i32
    %c0_i32_0 = arith.constant 0 : i32
    %c0_i32_1 = arith.constant 0 : i32
    return %arg0, %c0_i32, %c0_i32_0 : i32, i32, i32
  }
}

</mosaic_0001>

<bundles_post_ra>
// kernel: tpu_custom_call.1
= control target key start
LH: loop header
LB: loop body
LE: loop exit
PB: predicated region body
PF: predicated region fallthrough
CT: control target
= control target key end

     0   :  { %8 = vsyncpa [#allocation3], 0  ;;  %s250_s0 = inlined_call_operand.hbm [shape: f32[8,23], index: 0, kind: input, shape index: {}]   ;;  %s251_s1 = inlined_call_operand.hbm [shape: f32[23,128], index: 1, kind: input, shape index: {}]   ;;  %s252_s2 = inlined_call_operand.vmem [shape: f32[1,128], index: 2, kind: input, shape index: {}]   ;;  %s253_s3 = inlined_call_operand.hbm [shape: f32[1,1,128], index: 3, kind: output, shape index: {}]  }
   0x1   :  { %9 = vsyncpa [#allocation6], 0 }
   0x2   :  { %10 = vsyncpa [#allocation4], 0  ;;  %s21_s14 = sshll.u32 %s250_s0, 4  ;;  %s212_s15 = smov [#allocation2]   ;;  %s22_s14 = int_to_ptr.hbm [resolvable:$true] %s21_s14 }
   0x3   :  { %s23_s16 = sshll.u32 %s212_s15, 4  ;;  %s31_s19 = sshll.u32 %s251_s1, 4  ;;  %s24_s16 = int_to_ptr.vmem [resolvable:$true] %s23_s16  ;;  %s32_s19 = int_to_ptr.hbm [resolvable:$true] %s31_s19 }
   0x4   :  { %26 = dma.hbm_to_vmem [thread:$0]  %s22_s14, 128, %s24_s16, [#allocation3]  }
   0x5   :  { %s213_s20 = smov [#allocation5]   ;;  %s214_s22 = smov 128  }
   0x6   :  { %s33_s21 = sshll.u32 %s213_s20, 4  ;;  %s215_s23 = smov 8   ;;  %s34_s21 = int_to_ptr.vmem [resolvable:$true] %s33_s21 }
   0x7   :  { %39 = dma.hbm_to_vmem [thread:$0]  %s32_s19, 384, %s34_s21, [#allocation6], %s214_s22, %s214_s22, %s215_s23  }
   0x8   :  { %206 = dma.done.wait [#allocation3], 128  }
   0x9   :  { %207 = vsyncadd [#allocation3], 4294967168 }
   0xa   :  { %208 = dma.done.wait [#allocation6], 384  }
   0xb   :  { %209 = vsyncadd [#allocation6], 4294966912  ;;  %vm70_vm0 = vcmask 1046528   ;;  %v61_v0 = vld [vmem:[#allocation5 + $0x10] sm:$0x7f]  ;;  %v60_v1 = vld [vmem:[#allocation5 + $0x8] sm:$0xff] }
   0xc   :  { %125 = vmatpush.msk.msra.mxu0 %vm70_vm0, %v61_v0  ;;  %v59_v2 = vld [vmem:[#allocation5] sm:$0xff]  ;;  %v58_v3 = vld [vmem:[#allocation2] sm:$0xff]  ;;  %vm66_vm1 = vcmask 187392   ;;  %v216_v4 = vmov 0.0   ;;  %s217_s24 = smov [#allocation7]   ;;  %s112_s28 = sshll.u32 %s253_s3, 4  ;;  %s113_s28 = int_to_ptr.hbm [resolvable:$true] %s112_s28 }
   0xd   :  { %57 = vst [vmem:[#allocation7] sm:$0x1] %v216_v4  ;;  %v133_v5 = vld [vmem:[%s252_s2] ss:$0 sm:$0xff]  ;;  %s110_s25 = sshll.u32 %s217_s24, 4  ;;  %s111_s25 = int_to_ptr.vmem [resolvable:$true] %s110_s25 }
   0xe   :  { %88 = vmatpush.msra.mxu0 %v60_v1 }
  0x10   :  { %89 = vmatpush.msra.mxu0 %v59_v2 }
  0x11   :  { %126 = vmatmul.msk.f32.vlgmr.msra.gmra.mxu0 %vm66_vm1, %v58_v3 }
  0x14   :  { %v96_v15 = vld [vmem:[#allocation7] sm:$0x1] }
  0x8e   :  { %v91_v6 = vpop.f32.mrf.mxu0 }
  0x8f   :  { %v92_v7 = vadd.f32 %v133_v5, %v91_v6 }
  0x91   :  { %v94_v8 = vmul.f32 0.01, %v92_v7 }
  0x93   :  { %v95_v9 = vmax.f32 %v92_v7, %v94_v8 }
  0x95   :  { %v97_v10 = vrot.slane %v95_v9, 4 }
  0x97   :  { %v98_v11 = vadd.f32 %v97_v10, %v95_v9 }
  0x99   :  { %v99_v12 = vrot.slane %v98_v11, 2 }
  0x9b   :  { %v100_v13 = vadd.f32 %v99_v12, %v98_v11 }
  0x9d   :  { %v101_v14 = vrot.slane %v100_v13, 1 }
  0x9f   :  { %v102_v16 = vadd.f32 %v101_v14, %v100_v13 }
  0xa1   :  { %v103_v17 = vadd.f32 %v102_v16, %v96_v15 }
  0xa3   :  { %104 = vst [vmem:[#allocation7] sm:$0x1] %v103_v17 }
  0xa4   :  { %115 = dma.vmem_to_hbm [thread:$0]  %s111_s25, 16, %s113_s28, [#allocation4]  }
  0xa5   :  { %210 = dma.done.wait [#allocation4], 16  }
  0xa6   :  { %211 = vsyncadd [#allocation4], 4294967280 }
  0xa7   :  { %120 = vsyncpa [#allocation3], 1 }
  0xa8   :  { %121 = vsyncpa [#allocation6], 1 }
  0xa9   :  { %122 = vsyncpa [#allocation4], 1 }

</bundles_post_ra>
